<compile_context>
chip_gen: v7x
topology: tpu7x:2x2x1
jax: 0.10.0
libtpu: 0.0.40
codegen_flags: <defaults>
</compile_context>

<pallas_src>
import functools

import numpy as np
import jax
import jax.numpy as jnp
from jax.experimental import pallas as pl
from jax.experimental.pallas import tpu as pltpu

EPS = 1e-5


def _pack_weights(w_hwio, P):
    """(3,3,C,C) HWIO conv weight -> (3,3,P*C,P*C): block-diagonal over the P lane-packed
    samples ("virtual channels"), so packed samples never mix."""
    kh, kw, cin, cout = w_hwio.shape
    eye = jnp.eye(P, dtype=w_hwio.dtype)
    wp = jnp.einsum("pq,hwio->hwpiqo", eye, w_hwio)
    return wp.reshape(kh, kw, P * cin, P * cout)


def _band_weights(w_hwio, width):
    """(3,3,Cin,Cout) HWIO conv weight -> (3, width*Cin, width*Cout) block-banded matrices
    (one per kernel row), so a pad=1 conv along W becomes a plain dense matmul."""
    kh, kw, cin, cout = w_hwio.shape
    sel = np.zeros((kw, width, width), np.float32)      # [dw, w_in, w_out]
    for dw in range(kw):
        for w_out in range(width):
            w_in = w_out + dw - (kw // 2)
            if 0 <= w_in < width:
                sel[dw, w_in, w_out] = 1.0
    wb = jnp.einsum("dpw,hdio->hpiwo", jnp.asarray(sel, w_hwio.dtype), w_hwio)
    return wb.reshape(kh, width * cin, width * cout)


def _res_block_kernel(x_ref, w1_ref, w2_ref, aff_ref, red_ref, bmat_ref, o_ref, pad_ref,
                      *, B, H, L, Cp):
    """One grid step handles B lane-packed sample-pairs.
       x_ref:    (B, H, L)    unpadded input slab, L = W * Cp lanes (Cp = packed channels)
       w*_ref:   (3, L, L)    block-banded + block-diagonal conv weights (one per kernel row)
       aff_ref:  (4, L)       per-lane [gamma1, beta1, gamma2, beta2]
       red_ref:  (L, Cp)      per-channel averaging (1/(H*W)) reduce matrix
       bmat_ref: (Cp, L)      broadcast-back matrix (channel stats -> lane layout)
       pad_ref:  (H+2, L)     VMEM scratch holding the H-halo'd activation (reused per pair)."""
    f32 = jnp.float32

    red = red_ref[...].astype(f32)       # (L, Cp)
    bmat = bmat_ref[...].astype(f32)     # (Cp, L)
    g1 = aff_ref[0:1, :].astype(f32)     # (1, L)
    bt1 = aff_ref[1:2, :].astype(f32)
    g2 = aff_ref[2:3, :].astype(f32)
    bt2 = aff_ref[3:4, :].astype(f32)

    # Only the two halo rows need zeroing; the interior is rewritten before every read.
    pad_ref[0:1, :] = jnp.zeros((1, L), f32)
    pad_ref[H + 1:H + 2, :] = jnp.zeros((1, L), f32)

    def conv3(w_ref):
        acc = jnp.zeros((H, L), f32)
        for dh in range(3):              # static unroll over the 3 kernel rows
            acc = acc + jnp.dot(pad_ref[dh:dh + H, :], w_ref[dh].astype(f32),
                                preferred_element_type=f32)
        return acc

    def inorm(acc, gamma_l, beta_l):
        # One-pass per-(sample,channel) stats: lane-reduce matmul (L -> Cp), sublane sum over H,
        # then a tiny (Cp -> L) matmul broadcasts the stats back to the lane layout.
        mean_c = jnp.sum(jnp.dot(acc, red, preferred_element_type=f32),
                         axis=0, keepdims=True)                       # (1, Cp)
        ex2_c = jnp.sum(jnp.dot(acc * acc, red, preferred_element_type=f32),
                        axis=0, keepdims=True)                        # (1, Cp)
        mean = jnp.dot(mean_c, bmat, preferred_element_type=f32)      # (1, L)
        ex2 = jnp.dot(ex2_c, bmat, preferred_element_type=f32)        # (1, L)
        scale = gamma_l * jax.lax.rsqrt(ex2 - mean * mean + EPS)      # gamma folded into scale
        shift = beta_l - mean * scale
        return acc * scale + shift

    for s in range(B):                   # static unroll over the pairs handled this step
        x = x_ref[s].astype(f32)                         # (H, L)
        # ---- stage 1: conv -> IN -> ReLU (intermediate stays in VMEM) ----
        pad_ref[1:H + 1, :] = x
        h = jnp.maximum(inorm(conv3(w1_ref), g1, bt1), 0.0)
        # ---- stage 2: conv -> IN, then residual add ----
        pad_ref[1:H + 1, :] = h
        y = inorm(conv3(w2_ref), g2, bt2) + x
        o_ref[s] = y.astype(o_ref.dtype)


def residual_block(x_nchw, params):
    """Forward of ResidualBlock: x + main(x).  Input/output are NCHW (PyTorch convention)."""
    N, C, H, W = x_nchw.shape

    # Pack P=2 samples side-by-side in lanes ("virtual channels") when that makes the lane dim
    # 128-dense; otherwise fall back to P=1.
    P = 2 if (N % 2 == 0 and (W * C) % 128 != 0) else 1
    Cp = P * C
    L = W * Cp
    NP = N // P

    # Pairs per grid step: largest divisor of NP with a modest unroll / VMEM footprint.
    # TODO(synk): for large N, M-batch the conv matmuls as (B*H, L) @ (L, L) with a 3-D scratch
    # instead of the per-pair unrolled loop; keep NP//B even so the parallel axis splits across
    # both v7x TensorCores.
    B = 1
    for cand in range(1, NP + 1):
        if NP % cand == 0 and cand * H <= 128:
            B = cand

    # NCHW -> NHWC -> (N/P, H, W*P*C) lane-packed slab (no H padding in HBM; halo built in VMEM)
    x_nhwc = jnp.transpose(x_nchw, (0, 2, 3, 1))
    xs = x_nhwc.reshape(NP, P, H, W, C).transpose(0, 2, 3, 1, 4).reshape(NP, H, L)

    # Block-diagonal (over the packed pair) banded conv weights: (3, L, L) per conv.
    w1 = _band_weights(_pack_weights(params["w1"], P), W)
    w2 = _band_weights(_pack_weights(params["w2"], P), W)

    # Per-lane affine params: rows [gamma1, beta1, gamma2, beta2], lane = w*Cp + (p*C + c).
    def lane_aff(v):
        return jnp.tile(jnp.tile(v, P), W)
    aff = jnp.stack([lane_aff(params["g1"]), lane_aff(params["b1"]),
                     lane_aff(params["g2"]), lane_aff(params["b2"])], axis=0)   # (4, L)

    # Reduce / broadcast matrices for the per-(sample, channel) InstanceNorm stats.
    vc = np.arange(L) % Cp
    red = jnp.asarray((vc[:, None] == np.arange(Cp)[None, :]).astype(np.float32) / (H * W))
    bmat = jnp.asarray((np.arange(Cp)[:, None] == vc[None, :]).astype(np.float32))

    kernel = functools.partial(_res_block_kernel, B=B, H=H, L=L, Cp=Cp)
    out = pl.pallas_call(
        kernel,
        out_shape=jax.ShapeDtypeStruct((NP, H, L), x_nchw.dtype),
        grid_spec=pltpu.PrefetchScalarGridSpec(
            num_scalar_prefetch=0,
            grid=(NP // B,),
            in_specs=[
                pl.BlockSpec((B, H, L), lambda i: (i, 0, 0)),
                pl.BlockSpec((3, L, L), lambda i: (0, 0, 0)),
                pl.BlockSpec((3, L, L), lambda i: (0, 0, 0)),
                pl.BlockSpec((4, L), lambda i: (0, 0)),
                pl.BlockSpec((L, Cp), lambda i: (0, 0)),
                pl.BlockSpec((Cp, L), lambda i: (0, 0)),
            ],
            out_specs=pl.BlockSpec((B, H, L), lambda i: (i, 0, 0)),
            scratch_shapes=[pltpu.VMEM((H + 2, L), jnp.float32)],
        ),
        compiler_params=pltpu.CompilerParams(
            dimension_semantics=("parallel",),
            vmem_limit_bytes=32 * 1024 * 1024,
        ),
    )(xs, w1, w2, aff, red, bmat)

    # Unpack lanes back to samples and return NCHW.
    y = out.reshape(NP, H, W, P, C).transpose(0, 3, 1, 2, 4).reshape(N, H, W, C)
    return jnp.transpose(y, (0, 3, 1, 2))


def _reference(x_nchw, params):
    """Pure-JAX reference (same math, no Pallas) for a correctness check."""
    x = jnp.transpose(x_nchw, (0, 2, 3, 1))

    def conv(inp, w):
        return jax.lax.conv_general_dilated(
            inp, w, window_strides=(1, 1), padding="SAME",
            dimension_numbers=("NHWC", "HWIO", "NHWC"))

    def inorm(inp, g, b):
        mean = jnp.mean(inp, axis=(1, 2), keepdims=True)
        var = jnp.mean((inp - mean) ** 2, axis=(1, 2), keepdims=True)
        return (inp - mean) * jax.lax.rsqrt(var + EPS) * g + b

    h = jax.nn.relu(inorm(conv(x, params["w1"]), params["g1"], params["b1"]))
    y = inorm(conv(h, params["w2"]), params["g2"], params["b2"])
    return jnp.transpose(x + y, (0, 3, 1, 2))


if __name__ == "__main__":
    # NOTE: the residual add x + main(x) requires dim_in == dim_out (as in the module's use).
    N, C, H, W = 2, 4, 16, 16   # dim_in = dim_out = 4
    key = jax.random.PRNGKey(0)
    k_x, k_w1, k_w2, k_g1, k_b1, k_g2, k_b2 = jax.random.split(key, 7)

    x = jax.random.normal(k_x, (N, C, H, W), jnp.float32)
    # Deterministic synthetic parameters (HWIO conv weights; affine InstanceNorm params).
    params = {
        "w1": 0.1 * jax.random.normal(k_w1, (3, 3, C, C), jnp.float32),
        "g1": 1.0 + 0.1 * jax.random.normal(k_g1, (C,), jnp.float32),
        "b1": 0.1 * jax.random.normal(k_b1, (C,), jnp.float32),
        "w2": 0.1 * jax.random.normal(k_w2, (3, 3, C, C), jnp.float32),
        "g2": 1.0 + 0.1 * jax.random.normal(k_g2, (C,), jnp.float32),
        "b2": 0.1 * jax.random.normal(k_b2, (C,), jnp.float32),
    }
    # TODO(synk): self.fc1 (Linear 8*100*100 -> 500 -> 500 -> 5) is defined in __init__ but
    # never used in forward(), so it is intentionally not implemented.

    out = jax.jit(residual_block)(x, params)
    jax.block_until_ready(out)

    ref = _reference(x, params)
    assert out.shape == x.shape and out.dtype == x.dtype
    err = float(jnp.max(jnp.abs(out - ref)))
    assert jnp.allclose(out, ref, atol=1e-4, rtol=1e-4), err
    print("KERNEL_OK")
</pallas_src>

<mosaic_0001>
module attributes {stable_mosaic.version = 11 : i64} {
  func.func @_res_block_kernel(%arg0: i32, %arg1: memref<1x16x128xf32, #tpu.memory_space<vmem>>, %arg2: memref<3x128x128xf32, #tpu.memory_space<vmem>>, %arg3: memref<3x128x128xf32, #tpu.memory_space<vmem>>, %arg4: memref<4x128xf32, #tpu.memory_space<vmem>>, %arg5: memref<128x8xf32, #tpu.memory_space<vmem>>, %arg6: memref<8x128xf32, #tpu.memory_space<vmem>>, %arg7: memref<1x16x128xf32, #tpu.memory_space<vmem>>, %arg8: memref<18x128xf32, #tpu.memory_space<vmem>>) attributes {dimension_semantics = [#tpu.dimension_semantics<parallel>], iteration_bounds = array<i64: 1>, scalar_prefetch = 0 : i64, scratch_operands = 1 : i64, tpu.core_type = #tpu.core_type<tc>, window_params = [{transform_indices = @transform_0, window_bounds = array<i64: 1, 16, 128>}, {pipeline_mode = #tpu.pipeline_mode<synchronous>, transform_indices = @transform_1, window_bounds = array<i64: 3, 128, 128>}, {pipeline_mode = #tpu.pipeline_mode<synchronous>, transform_indices = @transform_2, window_bounds = array<i64: 3, 128, 128>}, {pipeline_mode = #tpu.pipeline_mode<synchronous>, transform_indices = @transform_3, window_bounds = array<i64: 4, 128>}, {pipeline_mode = #tpu.pipeline_mode<synchronous>, transform_indices = @transform_4, window_bounds = array<i64: 128, 8>}, {pipeline_mode = #tpu.pipeline_mode<synchronous>, transform_indices = @transform_5, window_bounds = array<i64: 8, 128>}, {transform_indices = @transform_6, window_bounds = array<i64: 1, 16, 128>}]} {
    %c0 = arith.constant 0 : index
    %c0_0 = arith.constant 0 : index
    %0 = vector.load %arg5[%c0, %c0_0] : memref<128x8xf32, #tpu.memory_space<vmem>>, vector<128x8xf32>
    %c0_1 = arith.constant 0 : index
    %c0_2 = arith.constant 0 : index
    %1 = vector.load %arg6[%c0_1, %c0_2] : memref<8x128xf32, #tpu.memory_space<vmem>>, vector<8x128xf32>
    %c0_3 = arith.constant 0 : index
    %c0_4 = arith.constant 0 : index
    %2 = vector.load %arg4[%c0_3, %c0_4] : memref<4x128xf32, #tpu.memory_space<vmem>>, vector<1x128xf32>
    %c1 = arith.constant 1 : index
    %c0_5 = arith.constant 0 : index
    %3 = vector.load %arg4[%c1, %c0_5] : memref<4x128xf32, #tpu.memory_space<vmem>>, vector<1x128xf32>
    %c2 = arith.constant 2 : index
    %c0_6 = arith.constant 0 : index
    %4 = vector.load %arg4[%c2, %c0_6] : memref<4x128xf32, #tpu.memory_space<vmem>>, vector<1x128xf32>
    %c3 = arith.constant 3 : index
    %c0_7 = arith.constant 0 : index
    %5 = vector.load %arg4[%c3, %c0_7] : memref<4x128xf32, #tpu.memory_space<vmem>>, vector<1x128xf32>
    %cst = arith.constant 0.000000e+00 : f32
    %6 = vector.broadcast %cst : f32 to vector<1x128xf32>
    %c0_8 = arith.constant 0 : index
    %c0_9 = arith.constant 0 : index
    %7 = vector.load %arg8[%c0_8, %c0_9] : memref<18x128xf32, #tpu.memory_space<vmem>>, vector<1x128xf32>
    tpu.vector_store %arg8[%c0_8, %c0_9], %6 {strides = array<i32>} : memref<18x128xf32, #tpu.memory_space<vmem>>, vector<1x128xf32>,
    %cst_10 = arith.constant 0.000000e+00 : f32
    %8 = vector.broadcast %cst_10 : f32 to vector<1x128xf32>
    %c17 = arith.constant 17 : index
    %c0_11 = arith.constant 0 : index
    %9 = vector.load %arg8[%c17, %c0_11] : memref<18x128xf32, #tpu.memory_space<vmem>>, vector<1x128xf32>
    tpu.vector_store %arg8[%c17, %c0_11], %8 {strides = array<i32>} : memref<18x128xf32, #tpu.memory_space<vmem>>, vector<1x128xf32>,
    %c0_12 = arith.constant 0 : index
    %c0_13 = arith.constant 0 : index
    %c0_14 = arith.constant 0 : index
    %10 = vector.load %arg1[%c0_12, %c0_13, %c0_14] : memref<1x16x128xf32, #tpu.memory_space<vmem>>, vector<1x16x128xf32>
    %11 = vector.shape_cast %10 : vector<1x16x128xf32> to vector<16x128xf32>
    %c1_15 = arith.constant 1 : index
    %c0_16 = arith.constant 0 : index
    %12 = vector.load %arg8[%c1_15, %c0_16] : memref<18x128xf32, #tpu.memory_space<vmem>>, vector<16x128xf32>
    tpu.vector_store %arg8[%c1_15, %c0_16], %11 {strides = array<i32>} : memref<18x128xf32, #tpu.memory_space<vmem>>, vector<16x128xf32>,
    %cst_17 = arith.constant 0.000000e+00 : f32
    %13 = vector.broadcast %cst_17 : f32 to vector<16x128xf32>
    %c0_18 = arith.constant 0 : index
    %c0_19 = arith.constant 0 : index
    %14 = vector.load %arg8[%c0_18, %c0_19] : memref<18x128xf32, #tpu.memory_space<vmem>>, vector<16x128xf32>
    %c0_20 = arith.constant 0 : index
    %c0_21 = arith.constant 0 : index
    %c0_22 = arith.constant 0 : index
    %15 = vector.load %arg2[%c0_20, %c0_21, %c0_22] : memref<3x128x128xf32, #tpu.memory_space<vmem>>, vector<1x128x128xf32>
    %16 = vector.shape_cast %15 : vector<1x128x128xf32> to vector<128x128xf32>
    %cst_23 = arith.constant dense<0.000000e+00> : vector<16x128xf32>
    %17 = tpu.matmul %14, %16, %cst_23 {dimension_numbers = #tpu.dot_dimension_numbers<[1], [0], [0], [1], [0, 0, 1, 1], [], []>} : vector<16x128xf32>, vector<128x128xf32>, vector<16x128xf32> -> vector<16x128xf32>
    %18 = arith.addf %13, %17 : vector<16x128xf32>
    %c1_24 = arith.constant 1 : index
    %c0_25 = arith.constant 0 : index
    %19 = vector.load %arg8[%c1_24, %c0_25] : memref<18x128xf32, #tpu.memory_space<vmem>>, vector<16x128xf32>
    %c1_26 = arith.constant 1 : index
    %c0_27 = arith.constant 0 : index
    %c0_28 = arith.constant 0 : index
    %20 = vector.load %arg2[%c1_26, %c0_27, %c0_28] : memref<3x128x128xf32, #tpu.memory_space<vmem>>, vector<1x128x128xf32>
    %21 = vector.shape_cast %20 : vector<1x128x128xf32> to vector<128x128xf32>
    %cst_29 = arith.constant dense<0.000000e+00> : vector<16x128xf32>
    %22 = tpu.matmul %19, %21, %cst_29 {dimension_numbers = #tpu.dot_dimension_numbers<[1], [0], [0], [1], [0, 0, 1, 1], [], []>} : vector<16x128xf32>, vector<128x128xf32>, vector<16x128xf32> -> vector<16x128xf32>
    %23 = arith.addf %18, %22 : vector<16x128xf32>
    %c2_30 = arith.constant 2 : index
    %c0_31 = arith.constant 0 : index
    %24 = vector.load %arg8[%c2_30, %c0_31] : memref<18x128xf32, #tpu.memory_space<vmem>>, vector<16x128xf32>
    %c2_32 = arith.constant 2 : index
    %c0_33 = arith.constant 0 : index
    %c0_34 = arith.constant 0 : index
    %25 = vector.load %arg2[%c2_32, %c0_33, %c0_34] : memref<3x128x128xf32, #tpu.memory_space<vmem>>, vector<1x128x128xf32>
    %26 = vector.shape_cast %25 : vector<1x128x128xf32> to vector<128x128xf32>
    %cst_35 = arith.constant dense<0.000000e+00> : vector<16x128xf32>
    %27 = tpu.matmul %24, %26, %cst_35 {dimension_numbers = #tpu.dot_dimension_numbers<[1], [0], [0], [1], [0, 0, 1, 1], [], []>} : vector<16x128xf32>, vector<128x128xf32>, vector<16x128xf32> -> vector<16x128xf32>
    %28 = arith.addf %23, %27 : vector<16x128xf32>
    %cst_36 = arith.constant dense<0.000000e+00> : vector<16x8xf32>
    %29 = tpu.matmul %28, %0, %cst_36 {dimension_numbers = #tpu.dot_dimension_numbers<[1], [0], [0], [1], [0, 0, 1, 1], [], []>} : vector<16x128xf32>, vector<128x8xf32>, vector<16x8xf32> -> vector<16x8xf32>
    %cst_37 = arith.constant dense<0.000000e+00> : vector<8xf32>
    %30 = vector.multi_reduction <add>, %29, %cst_37 [0] : vector<16x8xf32> to vector<8xf32>
    %31 = vector.shape_cast %30 : vector<8xf32> to vector<1x8xf32>
    %32 = arith.mulf %28, %28 : vector<16x128xf32>
    %cst_38 = arith.constant dense<0.000000e+00> : vector<16x8xf32>
    %33 = tpu.matmul %32, %0, %cst_38 {dimension_numbers = #tpu.dot_dimension_numbers<[1], [0], [0], [1], [0, 0, 1, 1], [], []>} : vector<16x128xf32>, vector<128x8xf32>, vector<16x8xf32> -> vector<16x8xf32>
    %cst_39 = arith.constant dense<0.000000e+00> : vector<8xf32>
    %34 = vector.multi_reduction <add>, %33, %cst_39 [0] : vector<16x8xf32> to vector<8xf32>
    %35 = vector.shape_cast %34 : vector<8xf32> to vector<1x8xf32>
    %cst_40 = arith.constant dense<0.000000e+00> : vector<1x128xf32>
    %36 = tpu.matmul %31, %1, %cst_40 {dimension_numbers = #tpu.dot_dimension_numbers<[1], [0], [0], [1], [0, 0, 1, 1], [], []>} : vector<1x8xf32>, vector<8x128xf32>, vector<1x128xf32> -> vector<1x128xf32>
    %cst_41 = arith.constant dense<0.000000e+00> : vector<1x128xf32>
    %37 = tpu.matmul %35, %1, %cst_41 {dimension_numbers = #tpu.dot_dimension_numbers<[1], [0], [0], [1], [0, 0, 1, 1], [], []>} : vector<1x8xf32>, vector<8x128xf32>, vector<1x128xf32> -> vector<1x128xf32>
    %38 = arith.mulf %36, %36 : vector<1x128xf32>
    %39 = arith.subf %37, %38 : vector<1x128xf32>
    %cst_42 = arith.constant 9.99999974E-6 : f32
    %40 = vector.broadcast %cst_42 : f32 to vector<1x128xf32>
    %41 = arith.addf %39, %40 : vector<1x128xf32>
    %42 = math.rsqrt %41 : vector<1x128xf32>
    %43 = arith.mulf %2, %42 : vector<1x128xf32>
    %44 = arith.mulf %36, %43 : vector<1x128xf32>
    %45 = arith.subf %3, %44 : vector<1x128xf32>
    %46 = vector.broadcast %43 : vector<1x128xf32> to vector<16x128xf32>
    %47 = arith.mulf %28, %46 : vector<16x128xf32>
    %48 = vector.broadcast %45 : vector<1x128xf32> to vector<16x128xf32>
    %49 = arith.addf %47, %48 : vector<16x128xf32>
    %cst_43 = arith.constant 0.000000e+00 : f32
    %50 = vector.broadcast %cst_43 : f32 to vector<16x128xf32>
    %51 = arith.maximumf %49, %50 : vector<16x128xf32>
    %c1_44 = arith.constant 1 : index
    %c0_45 = arith.constant 0 : index
    %52 = vector.load %arg8[%c1_44, %c0_45] : memref<18x128xf32, #tpu.memory_space<vmem>>, vector<16x128xf32>
    tpu.vector_store %arg8[%c1_44, %c0_45], %51 {strides = array<i32>} : memref<18x128xf32, #tpu.memory_space<vmem>>, vector<16x128xf32>,
    %cst_46 = arith.constant 0.000000e+00 : f32
    %53 = vector.broadcast %cst_46 : f32 to vector<16x128xf32>
    %c0_47 = arith.constant 0 : index
    %c0_48 = arith.constant 0 : index
    %54 = vector.load %arg8[%c0_47, %c0_48] : memref<18x128xf32, #tpu.memory_space<vmem>>, vector<16x128xf32>
    %c0_49 = arith.constant 0 : index
    %c0_50 = arith.constant 0 : index
    %c0_51 = arith.constant 0 : index
    %55 = vector.load %arg3[%c0_49, %c0_50, %c0_51] : memref<3x128x128xf32, #tpu.memory_space<vmem>>, vector<1x128x128xf32>
    %56 = vector.shape_cast %55 : vector<1x128x128xf32> to vector<128x128xf32>
    %cst_52 = arith.constant dense<0.000000e+00> : vector<16x128xf32>
    %57 = tpu.matmul %54, %56, %cst_52 {dimension_numbers = #tpu.dot_dimension_numbers<[1], [0], [0], [1], [0, 0, 1, 1], [], []>} : vector<16x128xf32>, vector<128x128xf32>, vector<16x128xf32> -> vector<16x128xf32>
    %58 = arith.addf %53, %57 : vector<16x128xf32>
    %c1_53 = arith.constant 1 : index
    %c0_54 = arith.constant 0 : index
    %59 = vector.load %arg8[%c1_53, %c0_54] : memref<18x128xf32, #tpu.memory_space<vmem>>, vector<16x128xf32>
    %c1_55 = arith.constant 1 : index
    %c0_56 = arith.constant 0 : index
    %c0_57 = arith.constant 0 : index
    %60 = vector.load %arg3[%c1_55, %c0_56, %c0_57] : memref<3x128x128xf32, #tpu.memory_space<vmem>>, vector<1x128x128xf32>
    %61 = vector.shape_cast %60 : vector<1x128x128xf32> to vector<128x128xf32>
    %cst_58 = arith.constant dense<0.000000e+00> : vector<16x128xf32>
    %62 = tpu.matmul %59, %61, %cst_58 {dimension_numbers = #tpu.dot_dimension_numbers<[1], [0], [0], [1], [0, 0, 1, 1], [], []>} : vector<16x128xf32>, vector<128x128xf32>, vector<16x128xf32> -> vector<16x128xf32>
    %63 = arith.addf %58, %62 : vector<16x128xf32>
    %c2_59 = arith.constant 2 : index
    %c0_60 = arith.constant 0 : index
    %64 = vector.load %arg8[%c2_59, %c0_60] : memref<18x128xf32, #tpu.memory_space<vmem>>, vector<16x128xf32>
    %c2_61 = arith.constant 2 : index
    %c0_62 = arith.constant 0 : index
    %c0_63 = arith.constant 0 : index
    %65 = vector.load %arg3[%c2_61, %c0_62, %c0_63] : memref<3x128x128xf32, #tpu.memory_space<vmem>>, vector<1x128x128xf32>
    %66 = vector.shape_cast %65 : vector<1x128x128xf32> to vector<128x128xf32>
    %cst_64 = arith.constant dense<0.000000e+00> : vector<16x128xf32>
    %67 = tpu.matmul %64, %66, %cst_64 {dimension_numbers = #tpu.dot_dimension_numbers<[1], [0], [0], [1], [0, 0, 1, 1], [], []>} : vector<16x128xf32>, vector<128x128xf32>, vector<16x128xf32> -> vector<16x128xf32>
    %68 = arith.addf %63, %67 : vector<16x128xf32>
    %cst_65 = arith.constant dense<0.000000e+00> : vector<16x8xf32>
    %69 = tpu.matmul %68, %0, %cst_65 {dimension_numbers = #tpu.dot_dimension_numbers<[1], [0], [0], [1], [0, 0, 1, 1], [], []>} : vector<16x128xf32>, vector<128x8xf32>, vector<16x8xf32> -> vector<16x8xf32>
    %cst_66 = arith.constant dense<0.000000e+00> : vector<8xf32>
    %70 = vector.multi_reduction <add>, %69, %cst_66 [0] : vector<16x8xf32> to vector<8xf32>
    %71 = vector.shape_cast %70 : vector<8xf32> to vector<1x8xf32>
    %72 = arith.mulf %68, %68 : vector<16x128xf32>
    %cst_67 = arith.constant dense<0.000000e+00> : vector<16x8xf32>
    %73 = tpu.matmul %72, %0, %cst_67 {dimension_numbers = #tpu.dot_dimension_numbers<[1], [0], [0], [1], [0, 0, 1, 1], [], []>} : vector<16x128xf32>, vector<128x8xf32>, vector<16x8xf32> -> vector<16x8xf32>
    %cst_68 = arith.constant dense<0.000000e+00> : vector<8xf32>
    %74 = vector.multi_reduction <add>, %73, %cst_68 [0] : vector<16x8xf32> to vector<8xf32>
    %75 = vector.shape_cast %74 : vector<8xf32> to vector<1x8xf32>
    %cst_69 = arith.constant dense<0.000000e+00> : vector<1x128xf32>
    %76 = tpu.matmul %71, %1, %cst_69 {dimension_numbers = #tpu.dot_dimension_numbers<[1], [0], [0], [1], [0, 0, 1, 1], [], []>} : vector<1x8xf32>, vector<8x128xf32>, vector<1x128xf32> -> vector<1x128xf32>
    %cst_70 = arith.constant dense<0.000000e+00> : vector<1x128xf32>
    %77 = tpu.matmul %75, %1, %cst_70 {dimension_numbers = #tpu.dot_dimension_numbers<[1], [0], [0], [1], [0, 0, 1, 1], [], []>} : vector<1x8xf32>, vector<8x128xf32>, vector<1x128xf32> -> vector<1x128xf32>
    %78 = arith.mulf %76, %76 : vector<1x128xf32>
    %79 = arith.subf %77, %78 : vector<1x128xf32>
    %cst_71 = arith.constant 9.99999974E-6 : f32
    %80 = vector.broadcast %cst_71 : f32 to vector<1x128xf32>
    %81 = arith.addf %79, %80 : vector<1x128xf32>
    %82 = math.rsqrt %81 : vector<1x128xf32>
    %83 = arith.mulf %4, %82 : vector<1x128xf32>
    %84 = arith.mulf %76, %83 : vector<1x128xf32>
    %85 = arith.subf %5, %84 : vector<1x128xf32>
    %86 = vector.broadcast %83 : vector<1x128xf32> to vector<16x128xf32>
    %87 = arith.mulf %68, %86 : vector<16x128xf32>
    %88 = vector.broadcast %85 : vector<1x128xf32> to vector<16x128xf32>
    %89 = arith.addf %87, %88 : vector<16x128xf32>
    %90 = arith.addf %89, %11 : vector<16x128xf32>
    %c0_72 = arith.constant 0 : index
    %c0_73 = arith.constant 0 : index
    %c0_74 = arith.constant 0 : index
    %91 = vector.load %arg7[%c0_72, %c0_73, %c0_74] : memref<1x16x128xf32, #tpu.memory_space<vmem>>, vector<1x16x128xf32>
    %92 = vector.shape_cast %91 : vector<1x16x128xf32> to vector<16x128xf32>
    %93 = vector.shape_cast %90 : vector<16x128xf32> to vector<1x16x128xf32>
    tpu.vector_store %arg7[%c0_72, %c0_73, %c0_74], %93 {strides = array<i32>} : memref<1x16x128xf32, #tpu.memory_space<vmem>>, vector<1x16x128xf32>,
    return
  }
  func.func @transform_0(%arg0: i32) -> (i32, i32, i32) {
    %c0_i32 = arith.constant 0 : i32
    %c0_i32_0 = arith.constant 0 : i32
    %c0_i32_1 = arith.constant 0 : i32
    return %arg0, %c0_i32, %c0_i32_0 : i32, i32, i32
  }
  func.func @transform_1(%arg0: i32) -> (i32, i32, i32) {
    %c0_i32 = arith.constant 0 : i32
    %c0_i32_0 = arith.constant 0 : i32
    %c0_i32_1 = arith.constant 0 : i32
    %c0_i32_2 = arith.constant 0 : i32
    return %c0_i32, %c0_i32_0, %c0_i32_1 : i32, i32, i32
  }
  func.func @transform_2(%arg0: i32) -> (i32, i32, i32) {
    %c0_i32 = arith.constant 0 : i32
    %c0_i32_0 = arith.constant 0 : i32
    %c0_i32_1 = arith.constant 0 : i32
    %c0_i32_2 = arith.constant 0 : i32
    return %c0_i32, %c0_i32_0, %c0_i32_1 : i32, i32, i32
  }
  func.func @transform_3(%arg0: i32) -> (i32, i32) {
    %c0_i32 = arith.constant 0 : i32
    %c0_i32_0 = arith.constant 0 : i32
    %c0_i32_1 = arith.constant 0 : i32
    return %c0_i32, %c0_i32_0 : i32, i32
  }
  func.func @transform_4(%arg0: i32) -> (i32, i32) {
    %c0_i32 = arith.constant 0 : i32
    %c0_i32_0 = arith.constant 0 : i32
    %c0_i32_1 = arith.constant 0 : i32
    return %c0_i32, %c0_i32_0 : i32, i32
  }
  func.func @transform_5(%arg0: i32) -> (i32, i32) {
    %c0_i32 = arith.constant 0 : i32
    %c0_i32_0 = arith.constant 0 : i32
    %c0_i32_1 = arith.constant 0 : i32
    return %c0_i32, %c0_i32_0 : i32, i32
  }
  func.func @transform_6(%arg0: i32) -> (i32, i32, i32) {
    %c0_i32 = arith.constant 0 : i32
    %c0_i32_0 = arith.constant 0 : i32
    %c0_i32_1 = arith.constant 0 : i32
    return %arg0, %c0_i32, %c0_i32_0 : i32, i32, i32
  }
}

</mosaic_0001>

<bundles_post_ra>
// kernel: tile.39
= control target key start
LH: loop header
LB: loop body
LE: loop exit
PB: predicated region body
PF: predicated region fallthrough
CT: control target
= control target key end

     0   :  { %s22_s0 = inlined_call_operand.vmem [shape: f32[4], index: 0, kind: input, shape index: {}]   ;;  %s23_s1 = inlined_call_operand.vmem [shape: f32[2,4], index: 1, kind: output, shape index: {}]  }
   0x1   :  { %v4_v0 = vld [vmem:[%s22_s0] ss:$0 sm:$0xff] }
   0x2   :  { %5 = vst [vmem:[%s23_s1] sm:$0x3] %v4_v0 }

// kernel: tile.42
= control target key start
LH: loop header
LB: loop body
LE: loop exit
PB: predicated region body
PF: predicated region fallthrough
CT: control target
= control target key end

     0   :  { %vm7_vm0 = vcmask 31744   ;;  %vm13_vm1 = vcmask 64544   ;;  %s39_s0 = inlined_call_operand.vmem [shape: f32[2,4], index: 0, kind: input, shape index: {}]   ;;  %s40_s1 = inlined_call_operand.vmem [shape: f32[8], index: 1, kind: output, shape index: {}]  }
   0x1   :  { %v4_v0 = vld [vmem:[%s39_s0] sm:$0x3]  ;;  %s22_s0 = smov 4  }
   0x2   :  { %5 = vst [vmem:[#allocation1] sm:$0x3] %v4_v0 }
   0x9   :  { %v10_v1 = vld [vmem:[#allocation1 + $0x1] sm:$0x1]   ;;  %v6_v2 = vld [vmem:[#allocation1] sm:$0x1]  }
   0xa   :  { %11 = vrot.lane.b32.xlu0 %v10_v1, %s22_s0  ;;  %8 = vst.msk [vmem:[#allocation0] sm:$0x1] %vm7_vm0, %v6_v2  }
  0x7c   :  { %v12_v3 = vpop.permute.xlu0 %11  }
  0x7d   :  { %14 = vst.msk [vmem:[#allocation0] sm:$0x1] %vm13_vm1, %v12_v3  }
  0x84   :  { %v18_v4 = vld [vmem:[#allocation0] sm:$0x1] }
  0x85   :  { %20 = vst [vmem:[%s40_s1] sm:$0x1] %v18_v4 }

// kernel: tile.43
= control target key start
LH: loop header
LB: loop body
LE: loop exit
PB: predicated region body
PF: predicated region fallthrough
CT: control target
= control target key end

     0   :  { %s28_s0 = inlined_call_operand.vmem [shape: f32[8], index: 0, kind: input, shape index: {}]   ;;  %s29_s1 = inlined_call_operand.vmem [shape: f32[16,8], index: 1, kind: output, shape index: {}]  }
   0x1   :  { %v4_v0 = vld [vmem:[%s28_s0] ss:$0 sm:$0xff] }
   0x2   :  { %5 = vst [vmem:[%s29_s1] sm:$0xff] %v4_v0  ;;  %8 = vst [vmem:[%s29_s1 + $0x8] sm:$0xff] %v4_v0 }

// kernel: tile.68
= control target key start
LH: loop header
LB: loop body
LE: loop exit
PB: predicated region body
PF: predicated region fallthrough
CT: control target
= control target key end

     0   :  { %s131_s10 = smov 120   ;;  %s132_s11 = smov 104   ;;  %vm3_vm0 = vcmask 64512   ;;  %vm9_vm1 = vcmask 1048512   ;;  %vm15_vm2 = vcmask 982912   ;;  %vm21_vm3 = vcmask 917312   ;;  %s207_s0 = inlined_call_operand.vmem [shape: f32[16,8], index: 0, kind: input, shape index: {}]   ;;  %s208_s1 = inlined_call_operand.vmem [shape: f32[1,128], index: 1, kind: output, shape index: {}]  }
   0x1   :  { %v101_v0 = vld [vmem:[%s207_s0 + $0xf] sm:$0x1]   ;;  %v103_v1 = vld [vmem:[%s207_s0 + $0xd] sm:$0x1]   ;;  %v102_v2 = vld [vmem:[%s207_s0 + $0xe] sm:$0x1]  }
   0x2   :  { %7 = vrot.lane.b32.xlu0 %v101_v0, %s131_s10  ;;  %19 = vrot.lane.b32.xlu1 %v103_v1, %s132_s11  ;;  %v104_v3 = vld [vmem:[%s207_s0 + $0xc] sm:$0x1]   ;;  %s133_s16 = smov 112   ;;  %s134_s17 = smov 96   ;;  %v105_v4 = vld [vmem:[%s207_s0 + $0xb] sm:$0x1]  }
   0x3   :  { %v106_v5 = vld [vmem:[%s207_s0 + $0xa] sm:$0x1]   ;;  %v2_v6 = vld [vmem:[%s207_s0] sm:$0x1]   ;;  %s135_s24 = smov 88   ;;  %s136_s25 = smov 80  }
   0x4   :  { %4 = vst.msk [vmem:[#allocation0] sm:$0x1] %vm3_vm0, %v2_v6   ;;  %v107_v7 = vld [vmem:[%s207_s0 + $0x9] sm:$0x1]   ;;  %v108_v8 = vld [vmem:[%s207_s0 + $0x8] sm:$0x1]  }
   0x5   :  { %s137_s30 = smov 72   ;;  %s138_s2 = smov 64   ;;  %v109_v9 = vld [vmem:[%s207_s0 + $0x7] sm:$0x1]   ;;  %v110_v10 = vld [vmem:[%s207_s0 + $0x6] sm:$0x1]  }
   0x6   :  { %13 = vrot.lane.b32.xlu0 %v102_v2, %s133_s16  ;;  %25 = vrot.lane.b32.xlu1 %v104_v3, %s134_s17  ;;  %s139_s7 = smov 56   ;;  %s140_s8 = smov 48   ;;  %v111_v11 = vld [vmem:[%s207_s0 + $0x5] sm:$0x1]   ;;  %v112_v12 = vld [vmem:[%s207_s0 + $0x4] sm:$0x1]  }
   0x7   :  { %s141_s13 = smov 40   ;;  %s142_s14 = smov 32   ;;  %v113_v13 = vld [vmem:[%s207_s0 + $0x3] sm:$0x1]   ;;  %v114_v14 = vld [vmem:[%s207_s0 + $0x2] sm:$0x1]  }
   0x8   :  { %s143_s19 = smov 24   ;;  %s144_s20 = smov 16   ;;  %v115_v15 = vld [vmem:[%s207_s0 + $0x1] sm:$0x1]   ;;  %vm27_vm4 = vcmask 851712   ;;  %vm33_vm5 = vcmask 786112  }
   0x9   :  { %s145_s0 = smov 8   ;;  %vm39_vm6 = vcmask 720512   ;;  %vm45_vm7 = vcmask 654912   ;;  %vm51_vm8 = vcmask 589312   ;;  %vm57_vm9 = vcmask 523712  }
   0xa   :  { %31 = vrot.lane.b32.xlu0 %v105_v4, %s135_s24  ;;  %37 = vrot.lane.b32.xlu1 %v106_v5, %s136_s25  ;;  %vm63_vm10 = vcmask 458112   ;;  %vm69_vm11 = vcmask 392512   ;;  %vm75_vm12 = vcmask 326912   ;;  %vm81_vm13 = vcmask 261312  }
   0xb   :  { %vm87_vm14 = vcmask 195712   ;;  %vm93_vm15 = vcmask 130112  }
   0xe   :  { %43 = vrot.lane.b32.xlu0 %v107_v7, %s137_s30  ;;  %49 = vrot.lane.b32.xlu1 %v108_v8, %s138_s2 }
  0x12   :  { %55 = vrot.lane.b32.xlu0 %v109_v9, %s139_s7  ;;  %61 = vrot.lane.b32.xlu1 %v110_v10, %s140_s8 }
  0x16   :  { %67 = vrot.lane.b32.xlu0 %v111_v11, %s141_s13  ;;  %73 = vrot.lane.b32.xlu1 %v112_v12, %s142_s14 }
  0x1a   :  { %79 = vrot.lane.b32.xlu0 %v113_v13, %s143_s19  ;;  %85 = vrot.lane.b32.xlu1 %v114_v14, %s144_s20 }
  0x1e   :  { %91 = vrot.lane.b32.xlu0 %v115_v15, %s145_s0 }
  0x74   :  { %v8_v16 = vpop.permute.xlu0 %7   ;;  %v20_v17 = vpop.permute.xlu1 %19  }
  0x75   :  { %10 = vst.msk [vmem:[#allocation0] sm:$0x1] %vm9_vm1, %v8_v16  }
  0x78   :  { %v14_v18 = vpop.permute.xlu0 %13   ;;  %v26_v19 = vpop.permute.xlu1 %25  }
  0x79   :  { %16 = vst.msk [vmem:[#allocation0] sm:$0x1] %vm15_vm2, %v14_v18  }
  0x7a   :  { %22 = vst.msk [vmem:[#allocation0] sm:$0x1] %vm21_vm3, %v20_v17  }
  0x7b   :  { %28 = vst.msk [vmem:[#allocation0] sm:$0x1] %vm27_vm4, %v26_v19  }
  0x7c   :  { %v32_v20 = vpop.permute.xlu0 %31   ;;  %v38_v21 = vpop.permute.xlu1 %37  }
  0x7d   :  { %34 = vst.msk [vmem:[#allocation0] sm:$0x1] %vm33_vm5, %v32_v20  }
  0x7e   :  { %40 = vst.msk [vmem:[#allocation0] sm:$0x1] %vm39_vm6, %v38_v21  }
  0x80   :  { %v44_v22 = vpop.permute.xlu0 %43   ;;  %v50_v23 = vpop.permute.xlu1 %49  }
  0x81   :  { %46 = vst.msk [vmem:[#allocation0] sm:$0x1] %vm45_vm7, %v44_v22  }
  0x82   :  { %52 = vst.msk [vmem:[#allocation0] sm:$0x1] %vm51_vm8, %v50_v23  }
  0x84   :  { %v56_v24 = vpop.permute.xlu0 %55   ;;  %v62_v25 = vpop.permute.xlu1 %61  }
  0x85   :  { %58 = vst.msk [vmem:[#allocation0] sm:$0x1] %vm57_vm9, %v56_v24  }
  0x86   :  { %64 = vst.msk [vmem:[#allocation0] sm:$0x1] %vm63_vm10, %v62_v25  }
  0x88   :  { %v68_v26 = vpop.permute.xlu0 %67   ;;  %v74_v27 = vpop.permute.xlu1 %73  }
  0x89   :  { %70 = vst.msk [vmem:[#allocation0] sm:$0x1] %vm69_vm11, %v68_v26  }
  0x8a   :  { %76 = vst.msk [vmem:[#allocation0] sm:$0x1] %vm75_vm12, %v74_v27  }
  0x8c   :  { %v80_v28 = vpop.permute.xlu0 %79   ;;  %v86_v29 = vpop.permute.xlu1 %85  }
  0x8d   :  { %82 = vst.msk [vmem:[#allocation0] sm:$0x1] %vm81_vm13, %v80_v28  }
  0x8e   :  { %88 = vst.msk [vmem:[#allocation0] sm:$0x1] %vm87_vm14, %v86_v29  }
  0x90   :  { %v92_v30 = vpop.permute.xlu0 %91  }
  0x91   :  { %94 = vst.msk [vmem:[#allocation0] sm:$0x1] %vm93_vm15, %v92_v30  }
  0x98   :  { %v98_v31 = vld [vmem:[#allocation0] sm:$0x1] }
  0x99   :  { %100 = vst [vmem:[%s208_s1] sm:$0x1] %v98_v31 }

// kernel: residual_block.1
= control target key start
LH: loop header
LB: loop body
LE: loop exit
PB: predicated region body
PF: predicated region fallthrough
CT: control target
= control target key end

     0   :  { %v2259_v3 = vmov 0.0   ;;  %vm2260_vm0 = vmmov 0   ;;  %vm408_vm1 = vcmask 64512   ;;  %s2811_s1 = inlined_call_operand.vmem [shape: f32[3,128,128], index: 1, kind: input, shape index: {}]   ;;  %s2812_s0 = inlined_call_operand.vmem [shape: f32[1,16,128], index: 0, kind: input, shape index: {}]   ;;  %s2813_s4 = inlined_call_operand.vmem [shape: f32[128,8], index: 4, kind: input, shape index: {}]   ;;  %s2814_s5 = inlined_call_operand.vmem [shape: f32[8,128], index: 5, kind: input, shape index: {}]   ;;  %s2815_s2 = inlined_call_operand.vmem [shape: f32[3,128,128], index: 2, kind: input, shape index: {}]   ;;  %s2816_s3 = inlined_call_operand.vmem [shape: f32[4,128], index: 3, kind: input, shape index: {}]   ;;  %s2817_s6 = inlined_call_operand.vmem [shape: f32[1,16,128], index: 6, kind: output, shape index: {}]  }
   0x1   :  { %v1299_v0 = vld [vmem:[%s2811_s1 + $0x80] sm:$0xff]  ;;  %v1300_v1 = vld [vmem:[%s2811_s1 + $0x88] sm:$0xff]  ;;  %v1301_v2 = vld [vmem:[%s2811_s1 + $0x90] sm:$0xff]  ;;  %44 = vst [vmem:[#allocation2] sm:$0x1] %v2259_v3 }
   0x2   :  { %45 = vst [vmem:[#allocation2 + $0x11] sm:$0x1] %v2259_v3  ;;  %v1925_v4 = vpack.c.bf16 %v1300_v1, %v1299_v0  ;;  %v1302_v5 = vld [vmem:[%s2811_s1 + $0x98] sm:$0xff]  ;;  %v1303_v7 = vld [vmem:[%s2811_s1 + $0xa0] sm:$0xff]  ;;  %v1304_v8 = vld [vmem:[%s2811_s1 + $0xa8] sm:$0xff] }
   0x3   :  { %v1929_v6 = vpack.c.bf16 %v1302_v5, %v1301_v2  ;;  %v1933_v9 = vpack.c.bf16 %v1304_v8, %v1303_v7  ;;  %v2319_v10 = vld [vmem:[%s2812_s0] sm:$0xff]  ;;  %v1305_v11 = vld [vmem:[%s2811_s1 + $0xb0] sm:$0xff]  ;;  %v1306_v12 = vld [vmem:[%s2811_s1 + $0xb8] sm:$0xff] }
   0x4   :  { %1926 = vmatprep.subr.bf16.mxu0 %v1925_v4  ;;  %48 = vst [vmem:[#allocation2 + $0x1] sm:$0xff] %v2319_v10  ;;  %1587 = vmatprep.mubr.f32.mxu0 %v2319_v10  ;;  %v2332_v13 = vld [vmem:[%s2812_s0 + $0x8] sm:$0xff]  ;;  %v1937_v14 = vpack.c.bf16 %v1306_v12, %v1305_v11  ;;  %v1307_v15 = vld [vmem:[%s2811_s1 + $0xc0] sm:$0xff]  ;;  %v1309_v18 = vld [vmem:[%s2811_s1 + $0xd0] sm:$0xff] }
   0x5   :  { %1928 = vmatpush3.bf16.msra.mxu0 %v1925_v4  ;;  %49 = vst [vmem:[#allocation2 + $0x9] sm:$0xff] %v2332_v13  ;;  %v1308_v16 = vld [vmem:[%s2811_s1 + $0xc8] sm:$0xff]  ;;  %v1310_v19 = vld [vmem:[%s2811_s1 + $0xd8] sm:$0xff]  ;;  %v1311_v21 = vld [vmem:[%s2811_s1 + $0xe0] sm:$0xff] }
   0x6   :  { %1930 = vmatprep.subr.bf16.mxu0 %v1929_v6  ;;  %v1941_v17 = vpack.c.bf16 %v1308_v16, %v1307_v15  ;;  %v1945_v20 = vpack.c.bf16 %v1310_v19, %v1309_v18  ;;  %v1312_v22 = vld [vmem:[%s2811_s1 + $0xe8] sm:$0xff]  ;;  %v23_v23 = vld [vmem:[%s2813_s4] sm:$0xff]  ;;  %v25_v25 = vld [vmem:[%s2813_s4 + $0x10] sm:$0xff] }
   0x7   :  { %v24_v24 = vld [vmem:[%s2813_s4 + $0x8] sm:$0xff]  ;;  %v26_v27 = vld [vmem:[%s2813_s4 + $0x18] sm:$0xff]  ;;  %v27_v29 = vld [vmem:[%s2813_s4 + $0x20] sm:$0xff]  ;;  %v1949_v31 = vpack.c.bf16 %v1312_v22, %v1311_v21 }
   0x8   :  { %v2362_v26 = vpack.c.bf16 %v24_v24, %v23_v23  ;;  %v2367_v28 = vpack.c.bf16 %v26_v27, %v25_v25  ;;  %v28_v30 = vld [vmem:[%s2813_s4 + $0x28] sm:$0xff]  ;;  %v1313_v32 = vld [vmem:[%s2811_s1 + $0xf0] sm:$0xff]  ;;  %v1314_v33 = vld [vmem:[%s2811_s1 + $0xf8] sm:$0xff] }
   0x9   :  { %1932 = vmatpush3.bf16.msra.mxu0 %v1929_v6  ;;  %v2384_v34 = vpack.c.bf16 %v28_v30, %v27_v29  ;;  %v29_v35 = vld [vmem:[%s2813_s4 + $0x30] sm:$0xff]  ;;  %v30_v36 = vld [vmem:[%s2813_s4 + $0x38] sm:$0xff]  ;;  %v1953_v37 = vpack.c.bf16 %v1314_v33, %v1313_v32  ;;  %v52_v38 = vld [vmem:[%s2811_s1] sm:$0xff] }
   0xa   :  { %1934 = vmatprep.subr.bf16.mxu0 %v1933_v9  ;;  %2022 = vmatprep.subr.bf16.mxu1 %v2362_v26  ;;  %v53_v39 = vld [vmem:[%s2811_s1 + $0x8] sm:$0xff]  ;;  %v2400_v40 = vpack.c.bf16 %v30_v36, %v29_v35  ;;  %v31_v41 = vld [vmem:[%s2813_s4 + $0x40] sm:$0xff]  ;;  %v54_v44 = vld [vmem:[%s2811_s1 + $0x10] sm:$0xff] }
   0xb   :  { %2024 = vmatpush3.bf16.msra.mxu1 %v2362_v26  ;;  %v32_v42 = vld [vmem:[%s2813_s4 + $0x48] sm:$0xff]  ;;  %v1957_v43 = vpack.c.bf16 %v53_v39, %v52_v38  ;;  %v55_v45 = vld [vmem:[%s2811_s1 + $0x18] sm:$0xff]  ;;  %v33_v47 = vld [vmem:[%s2813_s4 + $0x50] sm:$0xff] }
   0xc   :  { %2026 = vmatprep.subr.bf16.mxu1 %v2367_v28  ;;  %v2416_v46 = vpack.c.bf16 %v32_v42, %v31_v41  ;;  %v34_v48 = vld [vmem:[%s2813_s4 + $0x58] sm:$0xff]  ;;  %v1961_v49 = vpack.c.bf16 %v55_v45, %v54_v44  ;;  %v50_v50 = vld [vmem:[#allocation2] sm:$0xff]  ;;  %v57_v52 = vld [vmem:[%s2811_s1 + $0x28] sm:$0xff] }
   0xd   :  { %1936 = vmatpush3.bf16.msra.mxu0 %v1933_v9  ;;  %v56_v51 = vld [vmem:[%s2811_s1 + $0x20] sm:$0xff]  ;;  %v2433_v53 = vpack.c.bf16 %v34_v48, %v33_v47  ;;  %v36_v55 = vld [vmem:[%s2813_s4 + $0x68] sm:$0xff]  ;;  %v58_v57 = vld [vmem:[%s2811_s1 + $0x30] sm:$0xff] }
   0xe   :  { %1938 = vmatprep.subr.bf16.mxu0 %v1937_v14  ;;  %v35_v54 = vld [vmem:[%s2813_s4 + $0x60] sm:$0xff]  ;;  %v1965_v56 = vpack.c.bf16 %v57_v52, %v56_v51  ;;  %v59_v58 = vld [vmem:[%s2811_s1 + $0x38] sm:$0xff]  ;;  %v37_v60 = vld [vmem:[%s2813_s4 + $0x70] sm:$0xff] }
   0xf   :  { %2028 = vmatpush3.bf16.msra.mxu1 %v2367_v28  ;;  %v2449_v59 = vpack.c.bf16 %v36_v55, %v35_v54  ;;  %v38_v61 = vld [vmem:[%s2813_s4 + $0x78] sm:$0xff]  ;;  %v1969_v62 = vpack.c.bf16 %v59_v58, %v58_v57  ;;  %v60_v63 = vld [vmem:[%s2811_s1 + $0x40] sm:$0xff]  ;;  %v61_v0 = vld [vmem:[%s2811_s1 + $0x48] sm:$0xff] }
  0x10   :  { %2030 = vmatprep.subr.bf16.mxu1 %v2384_v34  ;;  %v2465_v1 = vpack.c.bf16 %v38_v61, %v37_v60  ;;  %v1973_v2 = vpack.c.bf16 %v61_v0, %v60_v63  ;;  %v62_v4 = vld [vmem:[%s2811_s1 + $0x50] sm:$0xff]  ;;  %v63_v5 = vld [vmem:[%s2811_s1 + $0x58] sm:$0xff]  ;;  %v64_v7 = vld [vmem:[%s2811_s1 + $0x60] sm:$0xff] }
  0x11   :  { %1940 = vmatpush3.bf16.msra.mxu0 %v1937_v14  ;;  %v1977_v6 = vpack.c.bf16 %v63_v5, %v62_v4  ;;  %v65_v8 = vld [vmem:[%s2811_s1 + $0x68] sm:$0xff]  ;;  %v66_v11 = vld [vmem:[%s2811_s1 + $0x70] sm:$0xff]  ;;  %v67_v12 = vld [vmem:[%s2811_s1 + $0x78] sm:$0xff] }
  0x12   :  { %1942 = vmatprep.subr.bf16.mxu0 %v1941_v17  ;;  %v1981_v9 = vpack.c.bf16 %v65_v8, %v64_v7  ;;  %v1985_v14 = vpack.c.bf16 %v67_v12, %v66_v11  ;;  %v1315_v15 = vld [vmem:[%s2811_s1 + $0x100] sm:$0xff]  ;;  %v1316_v16 = vld [vmem:[%s2811_s1 + $0x108] sm:$0xff]  ;;  %v1317_v18 = vld [vmem:[%s2811_s1 + $0x110] sm:$0xff] }
  0x13   :  { %2032 = vmatpush3.bf16.msra.mxu1 %v2384_v34  ;;  %v1318_v19 = vld [vmem:[%s2811_s1 + $0x118] sm:$0xff]  ;;  %v237_v22 = vld [vmem:[#allocation2 + $0x2] sm:$0xff]  ;;  %v1321_v27 = vld [vmem:[%s2811_s1 + $0x130] sm:$0xff] }
  0x14   :  { %2034 = vmatprep.subr.bf16.mxu1 %v2400_v40  ;;  %v1993_v21 = vpack.c.bf16 %v1318_v19, %v1317_v18  ;;  %v1319_v23 = vld [vmem:[%s2811_s1 + $0x120] sm:$0xff]  ;;  %v1320_v24 = vld [vmem:[%s2811_s1 + $0x128] sm:$0xff]  ;;  %v1322_v29 = vld [vmem:[%s2811_s1 + $0x138] sm:$0xff] }
  0x15   :  { %1944 = vmatpush3.bf16.msra.mxu0 %v1941_v17  ;;  %v1989_v17 = vpack.c.bf16 %v1316_v16, %v1315_v15  ;;  %v1997_v25 = vpack.c.bf16 %v1320_v24, %v1319_v23  ;;  %v2001_v30 = vpack.c.bf16 %v1322_v29, %v1321_v27  ;;  %v1324_v32 = vld [vmem:[%s2811_s1 + $0x148] sm:$0xff]  ;;  %v1325_v35 = vld [vmem:[%s2811_s1 + $0x150] sm:$0xff]  ;;  %v1326_v36 = vld [vmem:[%s2811_s1 + $0x158] sm:$0xff] }
  0x16   :  { %1946 = vmatprep.subr.bf16.mxu0 %v1945_v20  ;;  %v1327_v38 = vld [vmem:[%s2811_s1 + $0x160] sm:$0xff]  ;;  %v1328_v39 = vld [vmem:[%s2811_s1 + $0x168] sm:$0xff]  ;;  %v1329_v42 = vld [vmem:[%s2811_s1 + $0x170] sm:$0xff] }
  0x17   :  { %2036 = vmatpush3.bf16.msra.mxu1 %v2400_v40  ;;  %v2013_v41 = vpack.c.bf16 %v1328_v39, %v1327_v38  ;;  %v238_v45 = vld [vmem:[#allocation2 + $0xa] sm:$0xff]  ;;  %v2583_v51 = vld [vmem:[%s2814_s5] sm:$0xff]  ;;  %v1340_v27 = vld [vmem:[%s2815_s2 + $0xb8] sm:$0xff] }
  0x18   :  { %2038 = vmatprep.subr.bf16.mxu1 %v2416_v46  ;;  %v1333_v16 = vld [vmem:[%s2815_s2 + $0x80] sm:$0xff]  ;;  %v1335_v19 = vld [vmem:[%s2815_s2 + $0x90] sm:$0xff]  ;;  %v1338_v23 = vld [vmem:[%s2815_s2 + $0xa8] sm:$0xff] }
  0x19   :  { %1948 = vmatpush3.bf16.msra.mxu0 %v1945_v20  ;;  %v51_v20 = vld [vmem:[#allocation2 + $0x8] sm:$0xff] }
  0x1a   :  { %1950 = vmatprep.subr.bf16.mxu0 %v1949_v31  ;;  %v1346_v38 = vld [vmem:[%s2815_s2 + $0xe8] sm:$0xff] }
  0x1b   :  { %2040 = vmatpush3.bf16.msra.mxu1 %v2416_v46 }
  0x1c   :  { %2042 = vmatprep.subr.bf16.mxu1 %v2433_v53 }
  0x1d   :  { %1952 = vmatpush3.bf16.msra.mxu0 %v1949_v31  ;;  %v1323_v31 = vld [vmem:[%s2811_s1 + $0x140] sm:$0xff] }
  0x1e   :  { %1954 = vmatprep.subr.bf16.mxu0 %v1953_v37  ;;  %v2005_v33 = vpack.c.bf16 %v1324_v32, %v1323_v31  ;;  %v1342_v31 = vld [vmem:[%s2815_s2 + $0xc8] sm:$0xff] }
  0x1f   :  { %2044 = vmatpush3.bf16.msra.mxu1 %v2433_v53 }
  0x20   :  { %2046 = vmatprep.subr.bf16.mxu1 %v2449_v59 }
  0x21   :  { %1956 = vmatpush3.bf16.msra.mxu0 %v1953_v37  ;;  %v2009_v37 = vpack.c.bf16 %v1326_v36, %v1325_v35  ;;  %v1344_v35 = vld [vmem:[%s2815_s2 + $0xd8] sm:$0xff] }
  0x22   :  { %1958 = vmatprep.subr.bf16.mxu0 %v1957_v43 }
  0x23   :  { %2048 = vmatpush3.bf16.msra.mxu1 %v2449_v59 }
  0x24   :  { %1588 = vmatmul.mubr.f32.vlgmr.msra.gmra.mrb[0].mxu0 %v2332_v13  ;;  %2050 = vmatprep.subr.bf16.mxu1 %v2465_v1 }
  0x25   :  { %1960 = vmatpush3.bf16.msra.mxu0 %v1957_v43  ;;  %1622 = vmatprep.mubr.f32.mxu0 %v50_v50  ;;  %v1330_v43 = vld [vmem:[%s2811_s1 + $0x178] sm:$0xff] }
  0x26   :  { %1962 = vmatprep.subr.bf16.mxu0 %v1961_v49  ;;  %v2017_v44 = vpack.c.bf16 %v1330_v43, %v1329_v42  ;;  %v1348_v42 = vld [vmem:[%s2815_s2 + $0xf8] sm:$0xff] }
  0x27   :  { %2052 = vmatpush3.bf16.msra.mxu1 %v2465_v1 }
  0x28   :  { %2054 = vmatprep.subr.bf16.mxu1 %v2362_v26 }
  0x29   :  { %1964 = vmatpush3.bf16.msra.mxu0 %v1961_v49 }
  0x2a   :  { %1966 = vmatprep.subr.bf16.mxu0 %v1965_v56 }
  0x2d   :  { %1968 = vmatpush3.bf16.msra.mxu0 %v1965_v56 }
  0x2e   :  { %1970 = vmatprep.subr.bf16.mxu0 %v1969_v62 }
  0x31   :  { %1972 = vmatpush3.bf16.msra.mxu0 %v1969_v62 }
  0x32   :  { %1974 = vmatprep.subr.bf16.mxu0 %v1973_v2 }
  0x35   :  { %1976 = vmatpush3.bf16.msra.mxu0 %v1973_v2 }
  0x36   :  { %1978 = vmatprep.subr.bf16.mxu0 %v1977_v6 }
  0x39   :  { %1980 = vmatpush3.bf16.msra.mxu0 %v1977_v6 }
  0x3a   :  { %1982 = vmatprep.subr.bf16.mxu0 %v1981_v9 }
  0x3d   :  { %1984 = vmatpush3.bf16.msra.mxu0 %v1981_v9 }
  0x3e   :  { %1986 = vmatprep.subr.bf16.mxu0 %v1985_v14 }
  0x41   :  { %1988 = vmatpush3.bf16.msra.mxu0 %v1985_v14 }
  0x42   :  { %1990 = vmatprep.subr.bf16.mxu0 %v1989_v17 }
  0x44   :  { %1623 = vmatmul.mubr.f32.vlgmr.msra.gmra.mrb[0].mxu0 %v51_v20  ;;  %v1336_v20 = vld [vmem:[%s2815_s2 + $0x98] sm:$0xff] }
  0x45   :  { %1992 = vmatpush3.bf16.msra.mxu0 %v1989_v17  ;;  %1657 = vmatprep.mubr.f32.mxu0 %v237_v22  ;;  %v1334_v17 = vld [vmem:[%s2815_s2 + $0x88] sm:$0xff]  ;;  %v1337_v22 = vld [vmem:[%s2815_s2 + $0xa0] sm:$0xff] }
  0x46   :  { %1994 = vmatprep.subr.bf16.mxu0 %v1993_v21  ;;  %v2085_v18 = vpack.c.bf16 %v1334_v17, %v1333_v16  ;;  %v2093_v24 = vpack.c.bf16 %v1338_v23, %v1337_v22  ;;  %v678_v16 = vld [vmem:[%s2815_s2 + $0x18] sm:$0xff] }
  0x47   :  { %v682_v22 = vld [vmem:[%s2815_s2 + $0x38] sm:$0xff] }
  0x49   :  { %1996 = vmatpush3.bf16.msra.mxu0 %v1993_v21  ;;  %v2089_v21 = vpack.c.bf16 %v1336_v20, %v1335_v19 }
  0x4a   :  { %1998 = vmatprep.subr.bf16.mxu0 %v1997_v25 }
  0x4d   :  { %2000 = vmatpush3.bf16.msra.mxu0 %v1997_v25  ;;  %v1339_v25 = vld [vmem:[%s2815_s2 + $0xb0] sm:$0xff] }
  0x4e   :  { %2002 = vmatprep.subr.bf16.mxu0 %v2001_v30  ;;  %v2097_v29 = vpack.c.bf16 %v1340_v27, %v1339_v25  ;;  %v683_v25 = vld [vmem:[%s2815_s2 + $0x40] sm:$0xff]  ;;  %v684_v27 = vld [vmem:[%s2815_s2 + $0x48] sm:$0xff] }
  0x51   :  { %2004 = vmatpush3.bf16.msra.mxu0 %v2001_v30  ;;  %v1341_v30 = vld [vmem:[%s2815_s2 + $0xc0] sm:$0xff] }
  0x52   :  { %2006 = vmatprep.subr.bf16.mxu0 %v2005_v33  ;;  %v2101_v32 = vpack.c.bf16 %v1342_v31, %v1341_v30  ;;  %v685_v30 = vld [vmem:[%s2815_s2 + $0x50] sm:$0xff]  ;;  %v686_v31 = vld [vmem:[%s2815_s2 + $0x58] sm:$0xff] }
  0x55   :  { %2008 = vmatpush3.bf16.msra.mxu0 %v2005_v33  ;;  %v1343_v33 = vld [vmem:[%s2815_s2 + $0xd0] sm:$0xff] }
  0x56   :  { %2010 = vmatprep.subr.bf16.mxu0 %v2009_v37  ;;  %v2105_v36 = vpack.c.bf16 %v1344_v35, %v1343_v33  ;;  %v687_v33 = vld [vmem:[%s2815_s2 + $0x60] sm:$0xff]  ;;  %v688_v35 = vld [vmem:[%s2815_s2 + $0x68] sm:$0xff] }
  0x59   :  { %2012 = vmatpush3.bf16.msra.mxu0 %v2009_v37  ;;  %v1345_v37 = vld [vmem:[%s2815_s2 + $0xe0] sm:$0xff] }
  0x5a   :  { %2014 = vmatprep.subr.bf16.mxu0 %v2013_v41  ;;  %v2109_v39 = vpack.c.bf16 %v1346_v38, %v1345_v37  ;;  %v689_v37 = vld [vmem:[%s2815_s2 + $0x70] sm:$0xff]  ;;  %v690_v38 = vld [vmem:[%s2815_s2 + $0x78] sm:$0xff] }
  0x5d   :  { %2016 = vmatpush3.bf16.msra.mxu0 %v2013_v41  ;;  %v1347_v41 = vld [vmem:[%s2815_s2 + $0xf0] sm:$0xff] }
  0x5e   :  { %2018 = vmatprep.subr.bf16.mxu0 %v2017_v44  ;;  %v2113_v43 = vpack.c.bf16 %v1348_v42, %v1347_v41  ;;  %v1349_v41 = vld [vmem:[%s2815_s2 + $0x100] sm:$0xff]  ;;  %v1350_v42 = vld [vmem:[%s2815_s2 + $0x108] sm:$0xff] }
  0x61   :  { %2020 = vmatpush3.bf16.msra.mxu0 %v2017_v44  ;;  %v675_v44 = vld [vmem:[%s2815_s2] sm:$0xff] }
  0x62   :  { %2182 = vmatprep.subr.bf16.mxu0 %v2362_v26 }
  0x64   :  { %1658 = vmatmul.mubr.f32.vlgmr.msra.gmra.mrb[0].mxu0 %v238_v45  ;;  %v676_v45 = vld [vmem:[%s2815_s2 + $0x8] sm:$0xff] }
  0x65   :  { %2184 = vmatpush3.bf16.msra.mxu0 %v2362_v26 }
  0x66   :  { %2186 = vmatprep.subr.bf16.mxu0 %v2367_v28 }
  0x69   :  { %2188 = vmatpush3.bf16.msra.mxu0 %v2367_v28 }
  0x6a   :  { %2190 = vmatprep.subr.bf16.mxu0 %v2384_v34 }
  0x6d   :  { %2192 = vmatpush3.bf16.msra.mxu0 %v2384_v34 }
  0x6e   :  { %2194 = vmatprep.subr.bf16.mxu0 %v2400_v40 }
  0x71   :  { %2196 = vmatpush3.bf16.msra.mxu0 %v2400_v40 }
  0x72   :  { %2198 = vmatprep.subr.bf16.mxu0 %v2416_v46 }
  0x75   :  { %2200 = vmatpush3.bf16.msra.mxu0 %v2416_v46 }
  0x76   :  { %2202 = vmatprep.subr.bf16.mxu0 %v2433_v53 }
  0x79   :  { %2204 = vmatpush3.bf16.msra.mxu0 %v2433_v53 }
  0x7a   :  { %2206 = vmatprep.subr.bf16.mxu0 %v2449_v59 }
  0x7d   :  { %2208 = vmatpush3.bf16.msra.mxu0 %v2449_v59 }
  0x7e   :  { %2210 = vmatprep.subr.bf16.mxu0 %v2465_v1 }
  0x81   :  { %2212 = vmatpush3.bf16.msra.mxu0 %v2465_v1 }
  0x82   :  { %2214 = vmatprep.subr.bf16.mxu0 %v2362_v26 }
 0x137   :  { %v2554_v47 = vpop.f32.mrb[0].mxu0 }
 0x138   :  { %v2556_v48 = vpop.f32.mrb[1].mxu0  ;;  %v419_v50 = vmul.f32 %v2554_v47, %v2554_v47 }
 0x139   :  { %v418_v49 = vmul.f32 %v2556_v48, %v2556_v48  ;;  %1692 = vmatprep.mubr.f32.mxu1 %v2556_v48 }
 0x13a   :  { %1693 = vmatmul.mubr.f32.vlgmr.msra.gmra.mrb[0].mxu1 %v2554_v47 }
 0x13b   :  { %2056 = vmatpush3.bf16.msra.mxu1 %v2362_v26  ;;  %1727 = vmatprep.mubr.f32.mxu1 %v418_v49  ;;  %v2117_v49 = vpack.c.bf16 %v676_v45, %v675_v44  ;;  %v1351_v44 = vld [vmem:[%s2815_s2 + $0x110] sm:$0xff]  ;;  %v1352_v45 = vld [vmem:[%s2815_s2 + $0x118] sm:$0xff] }
 0x13c   :  { %2058 = vmatprep.subr.bf16.mxu1 %v2367_v28 }
 0x13f   :  { %2060 = vmatpush3.bf16.msra.mxu1 %v2367_v28 }
 0x140   :  { %2062 = vmatprep.subr.bf16.mxu1 %v2384_v34 }
 0x143   :  { %2064 = vmatpush3.bf16.msra.mxu1 %v2384_v34 }
 0x144   :  { %2066 = vmatprep.subr.bf16.mxu1 %v2400_v40 }
 0x147   :  { %2068 = vmatpush3.bf16.msra.mxu1 %v2400_v40 }
 0x148   :  { %2070 = vmatprep.subr.bf16.mxu1 %v2416_v46 }
 0x14b   :  { %2072 = vmatpush3.bf16.msra.mxu1 %v2416_v46 }
 0x14c   :  { %2074 = vmatprep.subr.bf16.mxu1 %v2433_v53 }
 0x14f   :  { %2076 = vmatpush3.bf16.msra.mxu1 %v2433_v53 }
 0x150   :  { %2078 = vmatprep.subr.bf16.mxu1 %v2449_v59 }
 0x153   :  { %2080 = vmatpush3.bf16.msra.mxu1 %v2449_v59 }
 0x154   :  { %2082 = vmatprep.subr.bf16.mxu1 %v2465_v1 }
 0x157   :  { %2084 = vmatpush3.bf16.msra.mxu1 %v2465_v1 }
 0x158   :  { %1730 = vmatprep.subr.mxu1 %v2259_v3 }
 0x15a   :  { %1728 = vmatmul.mubr.f32.vlgmr.msra.gmra.mrb[2].mxu1 %v419_v50 }
 0x15b   :  { %1732 = vmatprep.mubr.msk.f32.mxu1 %vm2260_vm0, %v2259_v3  ;;  %1731 = vmatpush3.msra.mxu1 %v2583_v51 }
 0x15c   :  { %1735 = vmatprep.subr.mxu1 %v2259_v3 }
 0x20d   :  { %v1694_v52 = vpop.f32.mrb[0].mxu1 }
 0x20e   :  { %v410_v54 = vsel %vm408_vm1, %v1694_v52, 0.0  ;;  %v399_v55 = vpop.f32.mrb[1].mxu1 }
 0x20f   :  { %v409_v56 = vsel %vm408_vm1, %v399_v55, 0.0 }
 0x210   :  { %v411_v57 = vadd.f32 %v410_v54, %v409_v56 }
 0x212   :  { %v412_v58 = vrot.slane %v411_v57, 4 }
 0x214   :  { %v413_v60 = vadd.f32 %v412_v58, %v411_v57 }
 0x216   :  { %v414_v61 = vrot.slane %v413_v60, 2 }
 0x218   :  { %v415_v62 = vadd.f32 %v414_v61, %v413_v60  ;;  %v657_v60 = vlaneseq }
 0x21a   :  { %v416_v63 = vrot.slane %v415_v62, 1  ;;  %v658_v61 = vshrl.u32 %v657_v60, 7 }
 0x21c   :  { %v417_v0 = vadd.f32 %v416_v63, %v415_v62  ;;  %v40_v62 = vld [vmem:[%s2816_s3] sm:$0x1]  ;;  %v2655_v63 = vsub.s32 0, %v658_v61 }
 0x21d   :  { %v1357_v61 = vld [vmem:[%s2815_s2 + $0x140] sm:$0xff] }
 0x21e   :  { %1733 = vmatmul.mubr.msk.f32.vlgmr.msra.gmra.mrb[4].mxu1 %vm408_vm1, %v417_v0 }
 0x21f   :  { %1736 = vmatpush3.msra.mxu1 %v2583_v51  ;;  %1737 = vmatprep.mubr.msk.f32.mxu1 %vm2260_vm0, %v2259_v3 }
 0x220   :  { %2086 = vmatprep.subr.bf16.mxu1 %v2085_v18 }
 0x22d   :  { %v1729_v2 = vpop.f32.mrb[2].mxu1 }
 0x22e   :  { %v496_v4 = vsel %vm408_vm1, %v1729_v2, 0.0  ;;  %v486_v5 = vpop.f32.mrb[3].mxu1 }
 0x22f   :  { %v495_v6 = vsel %vm408_vm1, %v486_v5, 0.0 }
 0x230   :  { %v497_v7 = vadd.f32 %v496_v4, %v495_v6  ;;  %v41_v4 = vld [vmem:[%s2816_s3 + $0x1] sm:$0x1] }
 0x232   :  { %v498_v8 = vrot.slane %v497_v7, 4 }
 0x234   :  { %v499_v9 = vadd.f32 %v498_v8, %v497_v7 }
 0x236   :  { %v500_v11 = vrot.slane %v499_v9, 2 }
 0x238   :  { %v501_v12 = vadd.f32 %v500_v11, %v499_v9 }
 0x23a   :  { %v502_v14 = vrot.slane %v501_v12, 1 }
 0x23c   :  { %v503_v15 = vadd.f32 %v502_v14, %v501_v12 }
 0x23e   :  { %1738 = vmatmul.mubr.msk.f32.vlgmr.msra.gmra.mrb[6].mxu1 %vm408_vm1, %v503_v15  ;;  %v677_v15 = vld [vmem:[%s2815_s2 + $0x10] sm:$0xff] }
 0x23f   :  { %2088 = vmatpush3.bf16.msra.mxu1 %v2085_v18  ;;  %v2121_v19 = vpack.c.bf16 %v678_v16, %v677_v15 }
 0x240   :  { %2090 = vmatprep.subr.bf16.mxu1 %v2089_v21 }
 0x243   :  { %2092 = vmatpush3.bf16.msra.mxu1 %v2089_v21  ;;  %v681_v21 = vld [vmem:[%s2815_s2 + $0x30] sm:$0xff] }
 0x244   :  { %2094 = vmatprep.subr.bf16.mxu1 %v2093_v24 }
 0x247   :  { %2096 = vmatpush3.bf16.msra.mxu1 %v2093_v24  ;;  %v2129_v24 = vpack.c.bf16 %v682_v22, %v681_v21 }
 0x248   :  { %2098 = vmatprep.subr.bf16.mxu1 %v2097_v29 }
 0x24b   :  { %2100 = vmatpush3.bf16.msra.mxu1 %v2097_v29  ;;  %v2133_v29 = vpack.c.bf16 %v684_v27, %v683_v25 }
 0x24c   :  { %2102 = vmatprep.subr.bf16.mxu1 %v2101_v32 }
 0x24f   :  { %2104 = vmatpush3.bf16.msra.mxu1 %v2101_v32  ;;  %v2137_v32 = vpack.c.bf16 %v686_v31, %v685_v30 }
 0x250   :  { %2106 = vmatprep.subr.bf16.mxu1 %v2105_v36 }
 0x253   :  { %2108 = vmatpush3.bf16.msra.mxu1 %v2105_v36  ;;  %v2141_v36 = vpack.c.bf16 %v688_v35, %v687_v33 }
 0x254   :  { %2110 = vmatprep.subr.bf16.mxu1 %v2109_v39 }
 0x257   :  { %2112 = vmatpush3.bf16.msra.mxu1 %v2109_v39  ;;  %v2145_v39 = vpack.c.bf16 %v690_v38, %v689_v37 }
 0x258   :  { %2114 = vmatprep.subr.bf16.mxu1 %v2113_v43 }
 0x25b   :  { %2116 = vmatpush3.bf16.msra.mxu1 %v2113_v43  ;;  %v2149_v43 = vpack.c.bf16 %v1350_v42, %v1349_v41 }
 0x25c   :  { %2118 = vmatprep.subr.bf16.mxu1 %v2117_v49 }
 0x2f1   :  { %v573_v50 = vpop.f32.mrb[4].mxu1 }
 0x2f2   :  { %v1734_v52 = vpop.f32.mrb[5].mxu1  ;;  %v650_v54 = vmul.f32 %v573_v50, %v573_v50 }
 0x2f3   :  { %v1353_v52 = vld [vmem:[%s2815_s2 + $0x120] sm:$0xff] }
 0x311   :  { %v646_v55 = vpop.f32.mrb[6].mxu1 }
 0x312   :  { %v651_v56 = vsub.f32 %v646_v55, %v650_v54  ;;  %v1739_v57 = vpop.f32.mrb[7].mxu1  ;;  %v1354_v54 = vld [vmem:[%s2815_s2 + $0x128] sm:$0xff] }
 0x313   :  { %v1355_v57 = vld [vmem:[%s2815_s2 + $0x130] sm:$0xff] }
 0x314   :  { %v652_v58 = vadd.f32 1e-05, %v651_v56  ;;  %v2157_v56 = vpack.c.bf16 %v1354_v54, %v1353_v52 }
 0x316   :  { %2255 = vrsqrt.f32 %v652_v58  ;;  %v1356_v58 = vld [vmem:[%s2815_s2 + $0x138] sm:$0xff] }
 0x317   :  { %v2161_v60 = vpack.c.bf16 %v1356_v58, %v1355_v57 }
 0x320   :  { %v2256_v0 = vpop.eup %2255 }
 0x321   :  { %v654_v2 = vmul.f32 %v2256_v0, %v40_v62  ;;  %v1358_v62 = vld [vmem:[%s2815_s2 + $0x148] sm:$0xff] }
 0x322   :  { %v2165_v0 = vpack.c.bf16 %v1358_v62, %v1357_v61 }
 0x323   :  { %v655_v5 = vmul.f32 %v654_v2, %v573_v50  ;;  %v660_v6 = vrot.slane %v654_v2, %v2655_v63  ;;  %v1359_v2 = vld [vmem:[%s2815_s2 + $0x150] sm:$0xff] }
 0x325   :  { %v656_v7 = vsub.f32 %v41_v4, %v655_v5  ;;  %v661_v8 = vmul.f32 %v660_v6, %v2556_v48  ;;  %v662_v9 = vmul.f32 %v2554_v47, %v660_v6  ;;  %v679_v47 = vld [vmem:[%s2815_s2 + $0x20] sm:$0xff]  ;;  %v680_v48 = vld [vmem:[%s2815_s2 + $0x28] sm:$0xff]  ;;  %v1360_v4 = vld [vmem:[%s2815_s2 + $0x158] sm:$0xff] }
 0x326   :  { %v2125_v20 = vpack.c.bf16 %v680_v48, %v679_v47  ;;  %v2169_v5 = vpack.c.bf16 %v1360_v4, %v1359_v2  ;;  %v1361_v6 = vld [vmem:[%s2815_s2 + $0x160] sm:$0xff] }
 0x327   :  { %v666_v11 = vrot.slane %v656_v7, %v2655_v63  ;;  %v1362_v7 = vld [vmem:[%s2815_s2 + $0x168] sm:$0xff] }
 0x329   :  { %v667_v12 = vadd.f32 %v666_v11, %v661_v8  ;;  %v668_v14 = vadd.f32 %v666_v11, %v662_v9  ;;  %v2173_v8 = vpack.c.bf16 %v1362_v7, %v1361_v6  ;;  %v1363_v9 = vld [vmem:[%s2815_s2 + $0x170] sm:$0xff]  ;;  %v1364_v11 = vld [vmem:[%s2815_s2 + $0x178] sm:$0xff] }
 0x32b   :  { %v669_v17 = vmax.f32 %v667_v12, 0.0  ;;  %v670_v18 = vmax.f32 %v668_v14, 0.0  ;;  %v2177_v12 = vpack.c.bf16 %v1364_v11, %v1363_v9 }
 0x32d   :  { %671 = vst [vmem:[#allocation2 + $0x1] sm:$0xff] %v669_v17  ;;  %672 = vst [vmem:[#allocation2 + $0x9] sm:$0xff] %v670_v18  ;;  %1772 = vmatprep.mubr.f32.mxu1 %v669_v17 }
 0x32e   :  { %1773 = vmatmul.mubr.f32.vlgmr.msra.gmra.mrb[8].mxu1 %v670_v18 }
 0x32f   :  { %2120 = vmatpush3.bf16.msra.mxu1 %v2117_v49  ;;  %v2153_v49 = vpack.c.bf16 %v1352_v45, %v1351_v44 }
 0x330   :  { %2122 = vmatprep.subr.bf16.mxu1 %v2121_v19 }
 0x333   :  { %2124 = vmatpush3.bf16.msra.mxu1 %v2121_v19 }
 0x334   :  { %v673_v23 = vld [vmem:[#allocation2] sm:$0xff]  ;;  %2126 = vmatprep.subr.bf16.mxu1 %v2125_v20  ;;  %v674_v50 = vld [vmem:[#allocation2 + $0x8] sm:$0xff] }
 0x335   :  { %1807 = vmatprep.mubr.f32.mxu1 %v673_v23  ;;  %v860_v55 = vld [vmem:[#allocation2 + $0x2] sm:$0xff]  ;;  %v861_v14 = vld [vmem:[#allocation2 + $0xa] sm:$0xff] }
 0x337   :  { %2128 = vmatpush3.bf16.msra.mxu1 %v2125_v20 }
 0x338   :  { %2130 = vmatprep.subr.bf16.mxu1 %v2129_v24 }
 0x33b   :  { %2132 = vmatpush3.bf16.msra.mxu1 %v2129_v24 }
 0x33c   :  { %2134 = vmatprep.subr.bf16.mxu1 %v2133_v29 }
 0x33f   :  { %2136 = vmatpush3.bf16.msra.mxu1 %v2133_v29 }
 0x340   :  { %2138 = vmatprep.subr.bf16.mxu1 %v2137_v32 }
 0x343   :  { %2140 = vmatpush3.bf16.msra.mxu1 %v2137_v32 }
 0x344   :  { %2142 = vmatprep.subr.bf16.mxu1 %v2141_v36 }
 0x347   :  { %2144 = vmatpush3.bf16.msra.mxu1 %v2141_v36 }
 0x348   :  { %2146 = vmatprep.subr.bf16.mxu1 %v2145_v39 }
 0x34b   :  { %2148 = vmatpush3.bf16.msra.mxu1 %v2145_v39  ;;  %v42_v39 = vld [vmem:[%s2816_s3 + $0x2] sm:$0x1] }
 0x34c   :  { %2150 = vmatprep.subr.bf16.mxu1 %v2149_v43 }
 0x34e   :  { %1808 = vmatmul.mubr.f32.vlgmr.msra.gmra.mrb[8].mxu1 %v674_v50 }
 0x34f   :  { %2152 = vmatpush3.bf16.msra.mxu1 %v2149_v43  ;;  %1842 = vmatprep.mubr.f32.mxu1 %v860_v55  ;;  %v43_v43 = vld [vmem:[%s2816_s3 + $0x3] sm:$0x1] }
 0x350   :  { %2154 = vmatprep.subr.bf16.mxu1 %v2153_v49 }
 0x353   :  { %2156 = vmatpush3.bf16.msra.mxu1 %v2153_v49 }
 0x354   :  { %2158 = vmatprep.subr.bf16.mxu1 %v2157_v56 }
 0x357   :  { %2160 = vmatpush3.bf16.msra.mxu1 %v2157_v56 }
 0x358   :  { %2162 = vmatprep.subr.bf16.mxu1 %v2161_v60 }
 0x35b   :  { %2164 = vmatpush3.bf16.msra.mxu1 %v2161_v60 }
 0x35c   :  { %2166 = vmatprep.subr.bf16.mxu1 %v2165_v0 }
 0x35f   :  { %2168 = vmatpush3.bf16.msra.mxu1 %v2165_v0 }
 0x360   :  { %2170 = vmatprep.subr.bf16.mxu1 %v2169_v5 }
 0x363   :  { %2172 = vmatpush3.bf16.msra.mxu1 %v2169_v5 }
 0x364   :  { %2174 = vmatprep.subr.bf16.mxu1 %v2173_v8 }
 0x367   :  { %2176 = vmatpush3.bf16.msra.mxu1 %v2173_v8 }
 0x368   :  { %2178 = vmatprep.subr.bf16.mxu1 %v2177_v12 }
 0x36b   :  { %2180 = vmatpush3.bf16.msra.mxu1 %v2177_v12 }
 0x36e   :  { %1843 = vmatmul.mubr.f32.vlgmr.msra.gmra.mrb[8].mxu1 %v861_v14 }
 0x441   :  { %v2754_v15 = vpop.f32.mrb[8].mxu1 }
 0x442   :  { %v2756_v16 = vpop.f32.mrb[9].mxu1 }
 0x443   :  { %v1040_v17 = vmul.f32 %v2756_v16, %v2756_v16  ;;  %1877 = vmatprep.mubr.f32.mxu0 %v2756_v16 }
 0x444   :  { %1878 = vmatmul.mubr.f32.vlgmr.msra.gmra.mrb[2].mxu0 %v2754_v15 }
 0x445   :  { %2216 = vmatpush3.bf16.msra.mxu0 %v2362_v26  ;;  %1912 = vmatprep.mubr.f32.mxu0 %v1040_v17  ;;  %v1041_v26 = vmul.f32 %v2754_v15, %v2754_v15 }
 0x446   :  { %2218 = vmatprep.subr.bf16.mxu0 %v2367_v28 }
 0x449   :  { %2220 = vmatpush3.bf16.msra.mxu0 %v2367_v28 }
 0x44a   :  { %2222 = vmatprep.subr.bf16.mxu0 %v2384_v34 }
 0x44d   :  { %2224 = vmatpush3.bf16.msra.mxu0 %v2384_v34 }
 0x44e   :  { %2226 = vmatprep.subr.bf16.mxu0 %v2400_v40 }
 0x451   :  { %2228 = vmatpush3.bf16.msra.mxu0 %v2400_v40 }
 0x452   :  { %2230 = vmatprep.subr.bf16.mxu0 %v2416_v46 }
 0x455   :  { %2232 = vmatpush3.bf16.msra.mxu0 %v2416_v46 }
 0x456   :  { %2234 = vmatprep.subr.bf16.mxu0 %v2433_v53 }
 0x459   :  { %2236 = vmatpush3.bf16.msra.mxu0 %v2433_v53 }
 0x45a   :  { %2238 = vmatprep.subr.bf16.mxu0 %v2449_v59 }
 0x45d   :  { %2240 = vmatpush3.bf16.msra.mxu0 %v2449_v59 }
 0x45e   :  { %2242 = vmatprep.subr.bf16.mxu0 %v2465_v1 }
 0x461   :  { %2244 = vmatpush3.bf16.msra.mxu0 %v2465_v1 }
 0x462   :  { %1915 = vmatprep.subr.mxu0 %v2259_v3 }
 0x464   :  { %1913 = vmatmul.mubr.f32.vlgmr.msra.gmra.mrb[4].mxu0 %v1041_v26 }
 0x465   :  { %1916 = vmatpush3.msra.mxu0 %v2583_v51  ;;  %1917 = vmatprep.mubr.msk.f32.mxu0 %vm2260_vm0, %v2259_v3 }
 0x466   :  { %1920 = vmatprep.subr.mxu0 %v2259_v3 }
 0x517   :  { %v1879_v28 = vpop.f32.mrb[2].mxu0 }
 0x518   :  { %v1032_v34 = vsel %vm408_vm1, %v1879_v28, 0.0  ;;  %v1022_v40 = vpop.f32.mrb[3].mxu0 }
 0x519   :  { %v1031_v46 = vsel %vm408_vm1, %v1022_v40, 0.0 }
 0x51a   :  { %v1033_v53 = vadd.f32 %v1032_v34, %v1031_v46 }
 0x51c   :  { %v1034_v59 = vrot.slane %v1033_v53, 4 }
 0x51e   :  { %v1035_v1 = vadd.f32 %v1034_v59, %v1033_v53 }
 0x520   :  { %v1036_v18 = vrot.slane %v1035_v1, 2 }
 0x522   :  { %v1037_v19 = vadd.f32 %v1036_v18, %v1035_v1 }
 0x524   :  { %v1038_v47 = vrot.slane %v1037_v19, 1 }
 0x526   :  { %v1039_v48 = vadd.f32 %v1038_v47, %v1037_v19 }
 0x528   :  { %1918 = vmatmul.mubr.msk.f32.vlgmr.msra.gmra.mrb[6].mxu0 %vm408_vm1, %v1039_v48 }
 0x529   :  { %1921 = vmatpush3.msra.mxu0 %v2583_v51  ;;  %1922 = vmatprep.mubr.msk.f32.mxu0 %vm2260_vm0, %v2259_v3 }
 0x537   :  { %v1914_v20 = vpop.f32.mrb[4].mxu0 }
 0x538   :  { %v1118_v21 = vsel %vm408_vm1, %v1914_v20, 0.0  ;;  %v1108_v22 = vpop.f32.mrb[5].mxu0 }
 0x539   :  { %v1117_v23 = vsel %vm408_vm1, %v1108_v22, 0.0 }
 0x53a   :  { %v1119_v24 = vadd.f32 %v1118_v21, %v1117_v23 }
 0x53c   :  { %v1120_v25 = vrot.slane %v1119_v24, 4 }
 0x53e   :  { %v1121_v27 = vadd.f32 %v1120_v25, %v1119_v24 }
 0x540   :  { %v1122_v29 = vrot.slane %v1121_v27, 2 }
 0x542   :  { %v1123_v30 = vadd.f32 %v1122_v29, %v1121_v27 }
 0x544   :  { %v1124_v31 = vrot.slane %v1123_v30, 1 }
 0x546   :  { %v1125_v32 = vadd.f32 %v1124_v31, %v1123_v30 }
 0x548   :  { %1923 = vmatmul.mubr.msk.f32.vlgmr.msra.gmra.mrb[8].mxu0 %vm408_vm1, %v1125_v32 }
 0x5fb   :  { %v1195_v33 = vpop.f32.mrb[6].mxu0 }
 0x5fc   :  { %v1919_v51 = vpop.f32.mrb[7].mxu0  ;;  %v1272_v35 = vmul.f32 %v1195_v33, %v1195_v33 }
 0x61b   :  { %v1268_v36 = vpop.f32.mrb[8].mxu0 }
 0x61c   :  { %v1273_v3 = vsub.f32 %v1268_v36, %v1272_v35  ;;  %v1924_v37 = vpop.f32.mrb[9].mxu0 }
 0x61e   :  { %v1274_v38 = vadd.f32 1e-05, %v1273_v3 }
 0x620   :  { %2257 = vrsqrt.f32 %v1274_v38 }
 0x62a   :  { %v2258_v41 = vpop.eup %2257 }
 0x62b   :  { %v1276_v42 = vmul.f32 %v2258_v41, %v42_v39 }
 0x62d   :  { %v1277_v44 = vmul.f32 %v1276_v42, %v1195_v33  ;;  %v1282_v45 = vrot.slane %v1276_v42, %v2655_v63 }
 0x62f   :  { %v1278_v49 = vsub.f32 %v43_v43, %v1277_v44  ;;  %v1283_v50 = vmul.f32 %v1282_v45, %v2756_v16  ;;  %v1284_v52 = vmul.f32 %v2754_v15, %v1282_v45 }
 0x631   :  { %v1288_v54 = vrot.slane %v1278_v49, %v2655_v63 }
 0x633   :  { %v1289_v55 = vadd.f32 %v1288_v54, %v1283_v50  ;;  %v1290_v56 = vadd.f32 %v1288_v54, %v1284_v52 }
 0x635   :  { %v1291_v57 = vadd.f32 %v1289_v55, %v2319_v10  ;;  %v1292_v58 = vadd.f32 %v1290_v56, %v2332_v13 }
 0x637   :  { %1293 = vst [vmem:[%s2817_s6] sm:$0xff] %v1291_v57  ;;  %1294 = vst [vmem:[%s2817_s6 + $0x8] sm:$0xff] %v1292_v58 }

</bundles_post_ra>
